<compile_context>
chip_gen: v7x
topology: tpu7x:2x2x1
jax: 0.10.0
libtpu: 0.0.40
codegen_flags: <defaults>
</compile_context>

<pallas_src>
import functools

import jax
import jax.numpy as jnp
from jax import lax
from jax.experimental import pallas as pl
from jax.experimental.pallas import tpu as pltpu

_SHIFTS = (-2, -1, 1, 2)


def _silu(z):
    # sigmoid(z) = 0.5 * (tanh(0.5*z) + 1): one EUP tanh instead of exp + recip.
    return z * (0.5 * jnp.tanh(0.5 * z) + 0.5)


def _sppf_body(x_ref, w1_ref, b1_ref, w2_ref, b2_ref, bias_ref, o_ref, cat_ref,
               *, W, matmul_dtype):
    """Shared kernel body. cat_ref=None -> interleaved cv2; else fused cv2."""
    HW = x_ref.shape[-1]

    # ---- cv1: 1x1 conv (BN folded) + SiLU; MXU accumulates in f32 ----
    x = x_ref[0].astype(matmul_dtype)                       # (c1, HW)
    z = jnp.dot(w1_ref[...].astype(matmul_dtype), x,
                preferred_element_type=jnp.float32) + b1_ref[...]
    x1 = _silu(z)                                           # (c_, HW) f32

    # Precomputed additive boundary biases (0 or -inf), hoisted once per step:
    # rows 0..3 = W-direction shifts (-2,-1,1,2), rows 4..7 = H-direction.
    wbias = [bias_ref[j:j + 1, :] for j in range(4)]        # each (1, HW)
    hbias = [bias_ref[j:j + 1, :] for j in range(4, 8)]

    def shifted(a, d):
        # a[i + d] along the flattened HW (lane) axis via an XLU rotation.
        # Wrapped lanes are always invalid under the boundary biases.
        return pltpu.roll(a, shift=(-d) % HW, axis=1)

    def maxpool5(a):
        # Separable 5x5/stride-1/pad-2 max pool: W pass within rows, then H pass.
        m = a                                               # d = 0 term
        for j, d in enumerate(_SHIFTS):
            m = jnp.maximum(m, shifted(a, d) + wbias[j])
        r = m                                               # d = 0 term
        for j, d in enumerate(_SHIFTS):
            r = jnp.maximum(r, shifted(m, d * W) + hbias[j])
        return r

    if cat_ref is not None:
        # ---- cv2 fused: stage the concat in VMEM scratch, one long-K matmul ----
        c_ = x1.shape[0]
        cat_ref[0:c_, :] = x1
        y = x1
        for k in range(1, 4):
            y = maxpool5(y)
            cat_ref[k * c_:(k + 1) * c_, :] = y
        z2 = jnp.dot(w2_ref[...].astype(matmul_dtype),
                     cat_ref[...].astype(matmul_dtype),
                     preferred_element_type=jnp.float32)
    else:
        # ---- cv2 interleaved with the pool chain (min live intermediates) ----
        z2 = jnp.dot(w2_ref[0].astype(matmul_dtype), x1.astype(matmul_dtype),
                     preferred_element_type=jnp.float32)
        y = x1
        for k in range(1, 4):
            y = maxpool5(y)
            z2 = z2 + jnp.dot(w2_ref[k].astype(matmul_dtype),
                              y.astype(matmul_dtype),
                              preferred_element_type=jnp.float32)

    z2 = z2 + b2_ref[...]
    o_ref[0] = _silu(z2).astype(o_ref.dtype)


def _kernel_interleaved(x_ref, w1_ref, b1_ref, w2_ref, b2_ref, bias_ref, o_ref,
                        *, W, matmul_dtype):
    _sppf_body(x_ref, w1_ref, b1_ref, w2_ref, b2_ref, bias_ref, o_ref, None,
               W=W, matmul_dtype=matmul_dtype)


def _kernel_fused(x_ref, w1_ref, b1_ref, w2_ref, b2_ref, bias_ref, o_ref, cat_ref,
                  *, W, matmul_dtype):
    _sppf_body(x_ref, w1_ref, b1_ref, w2_ref, b2_ref, bias_ref, o_ref, cat_ref,
               W=W, matmul_dtype=matmul_dtype)


def _pool_bias(H, W, HW_pad):
    """(8, HW_pad) f32: additive 0 / -inf boundary biases for the separable pool."""
    idx = jnp.arange(HW_pad, dtype=jnp.int32)
    row = idx // W
    col = idx % W
    in_image = idx < (H * W)
    rows = []
    for d in _SHIFTS:                                       # W-direction validity
        rows.append(jnp.where(in_image & (col + d >= 0) & (col + d < W),
                              0.0, -jnp.inf))
    for d in _SHIFTS:                                       # H-direction validity
        rows.append(jnp.where(in_image & (row + d >= 0) & (row + d < H),
                              0.0, -jnp.inf))
    return jnp.stack(rows).astype(jnp.float32)


def sppf_forward(x_nchw, w1, b1, w2, b2, *, matmul_dtype=jnp.float32,
                 fuse_cv2_max_c=256):
    """x_nchw: (N, c1, H, W); w1: (c_, c1); b1: (c_, 1); w2: (c2, 4*c_); b2: (c2, 1)."""
    N, C1, H, W = x_nchw.shape
    c_ = w1.shape[0]
    c2 = w2.shape[0]
    HW = H * W
    HW_pad = max(128, ((HW + 127) // 128) * 128)            # lane-dense last dim

    x = x_nchw.reshape(N, C1, HW)                           # pure reshape, no transpose
    if HW_pad != HW:
        # Zero-pad lanes; padded lanes never feed valid outputs (biases mask them)
        # and are sliced off after the call.
        x = jnp.pad(x, ((0, 0), (0, 0), (0, HW_pad - HW)))

    bias = _pool_bias(H, W, HW_pad)                         # (8, HW_pad), constant

    # cv2 strategy: single long-K matmul via VMEM concat scratch when c_ is small
    # (underfilled contraction otherwise) and sublane-aligned; else 4 interleaved
    # accumulated matmuls (minimal live footprint).
    fuse = (c_ % 8 == 0) and (c_ < fuse_cv2_max_c)

    if fuse:
        kernel = functools.partial(_kernel_fused, W=W, matmul_dtype=matmul_dtype)
        w2_arg = w2                                          # (c2, 4*c_)
        w2_spec = pl.BlockSpec((c2, 4 * c_), lambda n: (0, 0))
        scratch_shapes = [pltpu.VMEM((4 * c_, HW_pad), jnp.float32)]
    else:
        kernel = functools.partial(_kernel_interleaved, W=W, matmul_dtype=matmul_dtype)
        w2_arg = w2.reshape(c2, 4, c_).transpose(1, 0, 2)    # (4, c2, c_), tiny
        w2_spec = pl.BlockSpec((4, c2, c_), lambda n: (0, 0, 0))
        scratch_shapes = []

    # Raise the default scoped-VMEM limit (16 MiB on v5e / 32 MiB on v6e & v7x)
    # but never past v7x's 64 MiB physical capacity.
    est_bytes = 4 * HW_pad * (2 * C1 + 2 * c2 + 16 + 8 * c_) \
        + 4 * (c_ * C1 + 4 * c_ * c2)
    vmem_limit = int(min(64 * 1024 * 1024, max(32 * 1024 * 1024, 2 * est_bytes)))

    out = pl.pallas_call(
        kernel,
        out_shape=jax.ShapeDtypeStruct((N, c2, HW_pad), x_nchw.dtype),
        grid=(N,),
        in_specs=[
            pl.BlockSpec((1, C1, HW_pad), lambda n: (n, 0, 0)),
            pl.BlockSpec((c_, C1), lambda n: (0, 0)),
            pl.BlockSpec((c_, 1), lambda n: (0, 0)),
            w2_spec,
            pl.BlockSpec((c2, 1), lambda n: (0, 0)),
            pl.BlockSpec((8, HW_pad), lambda n: (0, 0)),
        ],
        out_specs=pl.BlockSpec((1, c2, HW_pad), lambda n: (n, 0, 0)),
        scratch_shapes=scratch_shapes,
        compiler_params=pltpu.CompilerParams(
            dimension_semantics=("parallel",),
            vmem_limit_bytes=vmem_limit,
        ),
    )(x, w1, b1, w2_arg, b2, bias)

    return out[:, :, :HW].reshape(N, c2, H, W)


def ref_sppf(x_nchw, w1, b1, w2, b2):
    """Pure-JAX reference (NCHW, lax.reduce_window max-pool with -inf pad)."""
    x = x_nchw.astype(jnp.float32)
    z = jnp.einsum('dc,nchw->ndhw', w1, x) + b1.reshape(1, -1, 1, 1)
    x1 = z * jax.nn.sigmoid(z)

    def mp(a):
        return lax.reduce_window(a, -jnp.inf, lax.max,
                                 (1, 1, 5, 5), (1, 1, 1, 1),
                                 [(0, 0), (0, 0), (2, 2), (2, 2)])

    y1 = mp(x1)
    y2 = mp(y1)
    y3 = mp(y2)
    cat = jnp.concatenate([x1, y1, y2, y3], axis=1)
    z2 = jnp.einsum('dc,nchw->ndhw', w2, cat) + b2.reshape(1, -1, 1, 1)
    out = z2 * jax.nn.sigmoid(z2)
    return out.astype(x_nchw.dtype)


def _make_params(key, c1, c2):
    """torch Conv(1x1, bias=False) + BatchNorm folded into (weight, bias)."""
    c_ = c1 // 2
    eps = 1e-5
    ks = jax.random.split(key, 10)
    w1_raw = jax.random.normal(ks[0], (c_, c1), jnp.float32) * 0.5
    w2_raw = jax.random.normal(ks[1], (c2, 4 * c_), jnp.float32) * 0.5

    def bn(kg, kb, km, kv, c):
        gamma = jax.random.uniform(kg, (c,), jnp.float32, 0.5, 1.5)
        beta = jax.random.normal(kb, (c,), jnp.float32) * 0.1
        mean = jax.random.normal(km, (c,), jnp.float32) * 0.1
        var = jax.random.uniform(kv, (c,), jnp.float32, 0.5, 1.5)
        return gamma, beta, mean, var

    g1, be1, m1, v1 = bn(ks[2], ks[3], ks[4], ks[5], c_)
    g2, be2, m2, v2 = bn(ks[6], ks[7], ks[8], ks[9], c2)
    s1 = g1 / jnp.sqrt(v1 + eps)
    s2 = g2 / jnp.sqrt(v2 + eps)
    return (w1_raw * s1[:, None], (be1 - m1 * s1)[:, None],
            w2_raw * s2[:, None], (be2 - m2 * s2)[:, None])


if __name__ == "__main__":
    key = jax.random.PRNGKey(0)
    k1, k2, k3, k4 = jax.random.split(key, 4)

    # ---- Config A: SPPF(c1=4, c2=8) on (2, 4, 16, 16) ----
    # c_=2 -> interleaved cv2 path, HW=256 already lane-dense, f32 MXU path.
    N, c1, c2, H, W = 2, 4, 8, 16, 16
    x = jax.random.normal(k1, (N, c1, H, W), jnp.float32)
    w1, b1, w2, b2 = _make_params(k2, c1, c2)
    out = jax.block_until_ready(sppf_forward(x, w1, b1, w2, b2))
    ref = ref_sppf(x, w1, b1, w2, b2)
    assert out.shape == (N, c2, H, W), out.shape
    err = float(jnp.max(jnp.abs(out - ref)))
    assert err < 2e-4, f"config A: max abs err = {err}"

    # ---- Config B: SPPF(c1=16, c2=16) on (1, 16, 10, 10) ----
    # c_=8 -> fused single-matmul cv2 with VMEM concat scratch, H*W=100 lane-padded
    # to 128, bf16 MXU operands with f32 accumulation (looser tolerance).
    N, c1, c2, H, W = 1, 16, 16, 10, 10
    x = jax.random.normal(k3, (N, c1, H, W), jnp.float32)
    w1, b1, w2, b2 = _make_params(k4, c1, c2)
    out = jax.block_until_ready(
        sppf_forward(x, w1, b1, w2, b2, matmul_dtype=jnp.bfloat16))
    ref = ref_sppf(x, w1, b1, w2, b2)
    assert out.shape == (N, c2, H, W), out.shape
    scale = float(jnp.max(jnp.abs(ref)))
    err = float(jnp.max(jnp.abs(out - ref)))
    assert err <= 5e-2 * scale + 1e-2, f"config B: err={err}, scale={scale}"

    print("KERNEL_OK")
</pallas_src>

<mosaic_0001>
module attributes {stable_mosaic.version = 11 : i64} {
  func.func @_kernel_interleaved(%arg0: i32, %arg1: memref<1x4x256xf32, #tpu.memory_space<vmem>>, %arg2: memref<2x4xf32, #tpu.memory_space<vmem>>, %arg3: memref<2x1xf32, #tpu.memory_space<vmem>>, %arg4: memref<4x8x2xf32, #tpu.memory_space<vmem>>, %arg5: memref<8x1xf32, #tpu.memory_space<vmem>>, %arg6: memref<8x256xf32, #tpu.memory_space<vmem>>, %arg7: memref<1x8x256xf32, #tpu.memory_space<vmem>>) attributes {dimension_semantics = [#tpu.dimension_semantics<parallel>], iteration_bounds = array<i64: 2>, scalar_prefetch = 0 : i64, scratch_operands = 0 : i64, tpu.core_type = #tpu.core_type<tc>, window_params = [{transform_indices = @transform_0, window_bounds = array<i64: 1, 4, 256>}, {pipeline_mode = #tpu.pipeline_mode<synchronous>, transform_indices = @transform_1, window_bounds = array<i64: 2, 4>}, {pipeline_mode = #tpu.pipeline_mode<synchronous>, transform_indices = @transform_2, window_bounds = array<i64: 2, 1>}, {pipeline_mode = #tpu.pipeline_mode<synchronous>, transform_indices = @transform_3, window_bounds = array<i64: 4, 8, 2>}, {pipeline_mode = #tpu.pipeline_mode<synchronous>, transform_indices = @transform_4, window_bounds = array<i64: 8, 1>}, {pipeline_mode = #tpu.pipeline_mode<synchronous>, transform_indices = @transform_5, window_bounds = array<i64: 8, 256>}, {transform_indices = @transform_6, window_bounds = array<i64: 1, 8, 256>}]} {
    %c0 = arith.constant 0 : index
    %c0_0 = arith.constant 0 : index
    %c0_1 = arith.constant 0 : index
    %0 = vector.load %arg1[%c0, %c0_0, %c0_1] : memref<1x4x256xf32, #tpu.memory_space<vmem>>, vector<1x4x256xf32>
    %1 = vector.shape_cast %0 : vector<1x4x256xf32> to vector<4x256xf32>
    %c0_2 = arith.constant 0 : index
    %c0_3 = arith.constant 0 : index
    %2 = vector.load %arg2[%c0_2, %c0_3] : memref<2x4xf32, #tpu.memory_space<vmem>>, vector<2x4xf32>
    %cst = arith.constant dense<0.000000e+00> : vector<2x256xf32>
    %3 = tpu.matmul %2, %1, %cst {dimension_numbers = #tpu.dot_dimension_numbers<[1], [0], [0], [1], [0, 0, 1, 1], [], []>} : vector<2x4xf32>, vector<4x256xf32>, vector<2x256xf32> -> vector<2x256xf32>
    %c0_4 = arith.constant 0 : index
    %c0_5 = arith.constant 0 : index
    %4 = vector.load %arg3[%c0_4, %c0_5] : memref<2x1xf32, #tpu.memory_space<vmem>>, vector<2x1xf32>
    %5 = vector.broadcast %4 : vector<2x1xf32> to vector<2x256xf32>
    %6 = arith.addf %3, %5 : vector<2x256xf32>
    %cst_6 = arith.constant 5.000000e-01 : f32
    %7 = vector.broadcast %cst_6 : f32 to vector<2x256xf32>
    %8 = arith.mulf %7, %6 : vector<2x256xf32>
    %9 = math.tanh %8 : vector<2x256xf32>
    %cst_7 = arith.constant 5.000000e-01 : f32
    %10 = vector.broadcast %cst_7 : f32 to vector<2x256xf32>
    %11 = arith.mulf %10, %9 : vector<2x256xf32>
    %cst_8 = arith.constant 5.000000e-01 : f32
    %12 = vector.broadcast %cst_8 : f32 to vector<2x256xf32>
    %13 = arith.addf %11, %12 : vector<2x256xf32>
    %14 = arith.mulf %6, %13 : vector<2x256xf32>
    %c0_9 = arith.constant 0 : index
    %c0_10 = arith.constant 0 : index
    %15 = vector.load %arg6[%c0_9, %c0_10] : memref<8x256xf32, #tpu.memory_space<vmem>>, vector<1x256xf32>
    %c1 = arith.constant 1 : index
    %c0_11 = arith.constant 0 : index
    %16 = vector.load %arg6[%c1, %c0_11] : memref<8x256xf32, #tpu.memory_space<vmem>>, vector<1x256xf32>
    %c2 = arith.constant 2 : index
    %c0_12 = arith.constant 0 : index
    %17 = vector.load %arg6[%c2, %c0_12] : memref<8x256xf32, #tpu.memory_space<vmem>>, vector<1x256xf32>
    %c3 = arith.constant 3 : index
    %c0_13 = arith.constant 0 : index
    %18 = vector.load %arg6[%c3, %c0_13] : memref<8x256xf32, #tpu.memory_space<vmem>>, vector<1x256xf32>
    %c4 = arith.constant 4 : index
    %c0_14 = arith.constant 0 : index
    %19 = vector.load %arg6[%c4, %c0_14] : memref<8x256xf32, #tpu.memory_space<vmem>>, vector<1x256xf32>
    %c5 = arith.constant 5 : index
    %c0_15 = arith.constant 0 : index
    %20 = vector.load %arg6[%c5, %c0_15] : memref<8x256xf32, #tpu.memory_space<vmem>>, vector<1x256xf32>
    %c6 = arith.constant 6 : index
    %c0_16 = arith.constant 0 : index
    %21 = vector.load %arg6[%c6, %c0_16] : memref<8x256xf32, #tpu.memory_space<vmem>>, vector<1x256xf32>
    %c7 = arith.constant 7 : index
    %c0_17 = arith.constant 0 : index
    %22 = vector.load %arg6[%c7, %c0_17] : memref<8x256xf32, #tpu.memory_space<vmem>>, vector<1x256xf32>
    %c0_18 = arith.constant 0 : index
    %c0_19 = arith.constant 0 : index
    %c0_20 = arith.constant 0 : index
    %23 = vector.load %arg4[%c0_18, %c0_19, %c0_20] : memref<4x8x2xf32, #tpu.memory_space<vmem>>, vector<1x8x2xf32>
    %24 = vector.shape_cast %23 : vector<1x8x2xf32> to vector<8x2xf32>
    %cst_21 = arith.constant dense<0.000000e+00> : vector<8x256xf32>
    %25 = tpu.matmul %24, %14, %cst_21 {dimension_numbers = #tpu.dot_dimension_numbers<[1], [0], [0], [1], [0, 0, 1, 1], [], []>} : vector<8x2xf32>, vector<2x256xf32>, vector<8x256xf32> -> vector<8x256xf32>
    %c2_i32 = arith.constant 2 : i32
    %26 = tpu.dynamic_rotate %14 by %c2_i32 dim 1 : vector<2x256xf32>, i32 -> vector<2x256xf32>
    %27 = vector.broadcast %15 : vector<1x256xf32> to vector<2x256xf32>
    %28 = arith.addf %26, %27 : vector<2x256xf32>
    %29 = arith.maximumf %14, %28 : vector<2x256xf32>
    %c1_i32 = arith.constant 1 : i32
    %30 = tpu.dynamic_rotate %14 by %c1_i32 dim 1 : vector<2x256xf32>, i32 -> vector<2x256xf32>
    %31 = vector.broadcast %16 : vector<1x256xf32> to vector<2x256xf32>
    %32 = arith.addf %30, %31 : vector<2x256xf32>
    %33 = arith.maximumf %29, %32 : vector<2x256xf32>
    %c255_i32 = arith.constant 255 : i32
    %34 = tpu.dynamic_rotate %14 by %c255_i32 dim 1 : vector<2x256xf32>, i32 -> vector<2x256xf32>
    %35 = vector.broadcast %17 : vector<1x256xf32> to vector<2x256xf32>
    %36 = arith.addf %34, %35 : vector<2x256xf32>
    %37 = arith.maximumf %33, %36 : vector<2x256xf32>
    %c254_i32 = arith.constant 254 : i32
    %38 = tpu.dynamic_rotate %14 by %c254_i32 dim 1 : vector<2x256xf32>, i32 -> vector<2x256xf32>
    %39 = vector.broadcast %18 : vector<1x256xf32> to vector<2x256xf32>
    %40 = arith.addf %38, %39 : vector<2x256xf32>
    %41 = arith.maximumf %37, %40 : vector<2x256xf32>
    %c32_i32 = arith.constant 32 : i32
    %42 = tpu.dynamic_rotate %41 by %c32_i32 dim 1 : vector<2x256xf32>, i32 -> vector<2x256xf32>
    %43 = vector.broadcast %19 : vector<1x256xf32> to vector<2x256xf32>
    %44 = arith.addf %42, %43 : vector<2x256xf32>
    %45 = arith.maximumf %41, %44 : vector<2x256xf32>
    %c16_i32 = arith.constant 16 : i32
    %46 = tpu.dynamic_rotate %41 by %c16_i32 dim 1 : vector<2x256xf32>, i32 -> vector<2x256xf32>
    %47 = vector.broadcast %20 : vector<1x256xf32> to vector<2x256xf32>
    %48 = arith.addf %46, %47 : vector<2x256xf32>
    %49 = arith.maximumf %45, %48 : vector<2x256xf32>
    %c240_i32 = arith.constant 240 : i32
    %50 = tpu.dynamic_rotate %41 by %c240_i32 dim 1 : vector<2x256xf32>, i32 -> vector<2x256xf32>
    %51 = vector.broadcast %21 : vector<1x256xf32> to vector<2x256xf32>
    %52 = arith.addf %50, %51 : vector<2x256xf32>
    %53 = arith.maximumf %49, %52 : vector<2x256xf32>
    %c224_i32 = arith.constant 224 : i32
    %54 = tpu.dynamic_rotate %41 by %c224_i32 dim 1 : vector<2x256xf32>, i32 -> vector<2x256xf32>
    %55 = vector.broadcast %22 : vector<1x256xf32> to vector<2x256xf32>
    %56 = arith.addf %54, %55 : vector<2x256xf32>
    %57 = arith.maximumf %53, %56 : vector<2x256xf32>
    %c1_22 = arith.constant 1 : index
    %c0_23 = arith.constant 0 : index
    %c0_24 = arith.constant 0 : index
    %58 = vector.load %arg4[%c1_22, %c0_23, %c0_24] : memref<4x8x2xf32, #tpu.memory_space<vmem>>, vector<1x8x2xf32>
    %59 = vector.shape_cast %58 : vector<1x8x2xf32> to vector<8x2xf32>
    %cst_25 = arith.constant dense<0.000000e+00> : vector<8x256xf32>
    %60 = tpu.matmul %59, %57, %cst_25 {dimension_numbers = #tpu.dot_dimension_numbers<[1], [0], [0], [1], [0, 0, 1, 1], [], []>} : vector<8x2xf32>, vector<2x256xf32>, vector<8x256xf32> -> vector<8x256xf32>
    %61 = arith.addf %25, %60 : vector<8x256xf32>
    %c2_i32_26 = arith.constant 2 : i32
    %62 = tpu.dynamic_rotate %57 by %c2_i32_26 dim 1 : vector<2x256xf32>, i32 -> vector<2x256xf32>
    %63 = vector.broadcast %15 : vector<1x256xf32> to vector<2x256xf32>
    %64 = arith.addf %62, %63 : vector<2x256xf32>
    %65 = arith.maximumf %57, %64 : vector<2x256xf32>
    %c1_i32_27 = arith.constant 1 : i32
    %66 = tpu.dynamic_rotate %57 by %c1_i32_27 dim 1 : vector<2x256xf32>, i32 -> vector<2x256xf32>
    %67 = vector.broadcast %16 : vector<1x256xf32> to vector<2x256xf32>
    %68 = arith.addf %66, %67 : vector<2x256xf32>
    %69 = arith.maximumf %65, %68 : vector<2x256xf32>
    %c255_i32_28 = arith.constant 255 : i32
    %70 = tpu.dynamic_rotate %57 by %c255_i32_28 dim 1 : vector<2x256xf32>, i32 -> vector<2x256xf32>
    %71 = vector.broadcast %17 : vector<1x256xf32> to vector<2x256xf32>
    %72 = arith.addf %70, %71 : vector<2x256xf32>
    %73 = arith.maximumf %69, %72 : vector<2x256xf32>
    %c254_i32_29 = arith.constant 254 : i32
    %74 = tpu.dynamic_rotate %57 by %c254_i32_29 dim 1 : vector<2x256xf32>, i32 -> vector<2x256xf32>
    %75 = vector.broadcast %18 : vector<1x256xf32> to vector<2x256xf32>
    %76 = arith.addf %74, %75 : vector<2x256xf32>
    %77 = arith.maximumf %73, %76 : vector<2x256xf32>
    %c32_i32_30 = arith.constant 32 : i32
    %78 = tpu.dynamic_rotate %77 by %c32_i32_30 dim 1 : vector<2x256xf32>, i32 -> vector<2x256xf32>
    %79 = vector.broadcast %19 : vector<1x256xf32> to vector<2x256xf32>
    %80 = arith.addf %78, %79 : vector<2x256xf32>
    %81 = arith.maximumf %77, %80 : vector<2x256xf32>
    %c16_i32_31 = arith.constant 16 : i32
    %82 = tpu.dynamic_rotate %77 by %c16_i32_31 dim 1 : vector<2x256xf32>, i32 -> vector<2x256xf32>
    %83 = vector.broadcast %20 : vector<1x256xf32> to vector<2x256xf32>
    %84 = arith.addf %82, %83 : vector<2x256xf32>
    %85 = arith.maximumf %81, %84 : vector<2x256xf32>
    %c240_i32_32 = arith.constant 240 : i32
    %86 = tpu.dynamic_rotate %77 by %c240_i32_32 dim 1 : vector<2x256xf32>, i32 -> vector<2x256xf32>
    %87 = vector.broadcast %21 : vector<1x256xf32> to vector<2x256xf32>
    %88 = arith.addf %86, %87 : vector<2x256xf32>
    %89 = arith.maximumf %85, %88 : vector<2x256xf32>
    %c224_i32_33 = arith.constant 224 : i32
    %90 = tpu.dynamic_rotate %77 by %c224_i32_33 dim 1 : vector<2x256xf32>, i32 -> vector<2x256xf32>
    %91 = vector.broadcast %22 : vector<1x256xf32> to vector<2x256xf32>
    %92 = arith.addf %90, %91 : vector<2x256xf32>
    %93 = arith.maximumf %89, %92 : vector<2x256xf32>
    %c2_34 = arith.constant 2 : index
    %c0_35 = arith.constant 0 : index
    %c0_36 = arith.constant 0 : index
    %94 = vector.load %arg4[%c2_34, %c0_35, %c0_36] : memref<4x8x2xf32, #tpu.memory_space<vmem>>, vector<1x8x2xf32>
    %95 = vector.shape_cast %94 : vector<1x8x2xf32> to vector<8x2xf32>
    %cst_37 = arith.constant dense<0.000000e+00> : vector<8x256xf32>
    %96 = tpu.matmul %95, %93, %cst_37 {dimension_numbers = #tpu.dot_dimension_numbers<[1], [0], [0], [1], [0, 0, 1, 1], [], []>} : vector<8x2xf32>, vector<2x256xf32>, vector<8x256xf32> -> vector<8x256xf32>
    %97 = arith.addf %61, %96 : vector<8x256xf32>
    %c2_i32_38 = arith.constant 2 : i32
    %98 = tpu.dynamic_rotate %93 by %c2_i32_38 dim 1 : vector<2x256xf32>, i32 -> vector<2x256xf32>
    %99 = vector.broadcast %15 : vector<1x256xf32> to vector<2x256xf32>
    %100 = arith.addf %98, %99 : vector<2x256xf32>
    %101 = arith.maximumf %93, %100 : vector<2x256xf32>
    %c1_i32_39 = arith.constant 1 : i32
    %102 = tpu.dynamic_rotate %93 by %c1_i32_39 dim 1 : vector<2x256xf32>, i32 -> vector<2x256xf32>
    %103 = vector.broadcast %16 : vector<1x256xf32> to vector<2x256xf32>
    %104 = arith.addf %102, %103 : vector<2x256xf32>
    %105 = arith.maximumf %101, %104 : vector<2x256xf32>
    %c255_i32_40 = arith.constant 255 : i32
    %106 = tpu.dynamic_rotate %93 by %c255_i32_40 dim 1 : vector<2x256xf32>, i32 -> vector<2x256xf32>
    %107 = vector.broadcast %17 : vector<1x256xf32> to vector<2x256xf32>
    %108 = arith.addf %106, %107 : vector<2x256xf32>
    %109 = arith.maximumf %105, %108 : vector<2x256xf32>
    %c254_i32_41 = arith.constant 254 : i32
    %110 = tpu.dynamic_rotate %93 by %c254_i32_41 dim 1 : vector<2x256xf32>, i32 -> vector<2x256xf32>
    %111 = vector.broadcast %18 : vector<1x256xf32> to vector<2x256xf32>
    %112 = arith.addf %110, %111 : vector<2x256xf32>
    %113 = arith.maximumf %109, %112 : vector<2x256xf32>
    %c32_i32_42 = arith.constant 32 : i32
    %114 = tpu.dynamic_rotate %113 by %c32_i32_42 dim 1 : vector<2x256xf32>, i32 -> vector<2x256xf32>
    %115 = vector.broadcast %19 : vector<1x256xf32> to vector<2x256xf32>
    %116 = arith.addf %114, %115 : vector<2x256xf32>
    %117 = arith.maximumf %113, %116 : vector<2x256xf32>
    %c16_i32_43 = arith.constant 16 : i32
    %118 = tpu.dynamic_rotate %113 by %c16_i32_43 dim 1 : vector<2x256xf32>, i32 -> vector<2x256xf32>
    %119 = vector.broadcast %20 : vector<1x256xf32> to vector<2x256xf32>
    %120 = arith.addf %118, %119 : vector<2x256xf32>
    %121 = arith.maximumf %117, %120 : vector<2x256xf32>
    %c240_i32_44 = arith.constant 240 : i32
    %122 = tpu.dynamic_rotate %113 by %c240_i32_44 dim 1 : vector<2x256xf32>, i32 -> vector<2x256xf32>
    %123 = vector.broadcast %21 : vector<1x256xf32> to vector<2x256xf32>
    %124 = arith.addf %122, %123 : vector<2x256xf32>
    %125 = arith.maximumf %121, %124 : vector<2x256xf32>
    %c224_i32_45 = arith.constant 224 : i32
    %126 = tpu.dynamic_rotate %113 by %c224_i32_45 dim 1 : vector<2x256xf32>, i32 -> vector<2x256xf32>
    %127 = vector.broadcast %22 : vector<1x256xf32> to vector<2x256xf32>
    %128 = arith.addf %126, %127 : vector<2x256xf32>
    %129 = arith.maximumf %125, %128 : vector<2x256xf32>
    %c3_46 = arith.constant 3 : index
    %c0_47 = arith.constant 0 : index
    %c0_48 = arith.constant 0 : index
    %130 = vector.load %arg4[%c3_46, %c0_47, %c0_48] : memref<4x8x2xf32, #tpu.memory_space<vmem>>, vector<1x8x2xf32>
    %131 = vector.shape_cast %130 : vector<1x8x2xf32> to vector<8x2xf32>
    %cst_49 = arith.constant dense<0.000000e+00> : vector<8x256xf32>
    %132 = tpu.matmul %131, %129, %cst_49 {dimension_numbers = #tpu.dot_dimension_numbers<[1], [0], [0], [1], [0, 0, 1, 1], [], []>} : vector<8x2xf32>, vector<2x256xf32>, vector<8x256xf32> -> vector<8x256xf32>
    %133 = arith.addf %97, %132 : vector<8x256xf32>
    %c0_50 = arith.constant 0 : index
    %c0_51 = arith.constant 0 : index
    %134 = vector.load %arg5[%c0_50, %c0_51] : memref<8x1xf32, #tpu.memory_space<vmem>>, vector<8x1xf32>
    %135 = vector.broadcast %134 : vector<8x1xf32> to vector<8x256xf32>
    %136 = arith.addf %133, %135 : vector<8x256xf32>
    %cst_52 = arith.constant 5.000000e-01 : f32
    %137 = vector.broadcast %cst_52 : f32 to vector<8x256xf32>
    %138 = arith.mulf %137, %136 : vector<8x256xf32>
    %139 = math.tanh %138 : vector<8x256xf32>
    %cst_53 = arith.constant 5.000000e-01 : f32
    %140 = vector.broadcast %cst_53 : f32 to vector<8x256xf32>
    %141 = arith.mulf %140, %139 : vector<8x256xf32>
    %cst_54 = arith.constant 5.000000e-01 : f32
    %142 = vector.broadcast %cst_54 : f32 to vector<8x256xf32>
    %143 = arith.addf %141, %142 : vector<8x256xf32>
    %144 = arith.mulf %136, %143 : vector<8x256xf32>
    %c0_55 = arith.constant 0 : index
    %c0_56 = arith.constant 0 : index
    %c0_57 = arith.constant 0 : index
    %145 = vector.load %arg7[%c0_55, %c0_56, %c0_57] : memref<1x8x256xf32, #tpu.memory_space<vmem>>, vector<1x8x256xf32>
    %146 = vector.shape_cast %145 : vector<1x8x256xf32> to vector<8x256xf32>
    %147 = vector.shape_cast %144 : vector<8x256xf32> to vector<1x8x256xf32>
    tpu.vector_store %arg7[%c0_55, %c0_56, %c0_57], %147 {strides = array<i32>} : memref<1x8x256xf32, #tpu.memory_space<vmem>>, vector<1x8x256xf32>,
    return
  }
  func.func @transform_0(%arg0: i32) -> (i32, i32, i32) {
    %c0_i32 = arith.constant 0 : i32
    %c0_i32_0 = arith.constant 0 : i32
    %c0_i32_1 = arith.constant 0 : i32
    return %arg0, %c0_i32, %c0_i32_0 : i32, i32, i32
  }
  func.func @transform_1(%arg0: i32) -> (i32, i32) {
    %c0_i32 = arith.constant 0 : i32
    %c0_i32_0 = arith.constant 0 : i32
    %c0_i32_1 = arith.constant 0 : i32
    return %c0_i32, %c0_i32_0 : i32, i32
  }
  func.func @transform_2(%arg0: i32) -> (i32, i32) {
    %c0_i32 = arith.constant 0 : i32
    %c0_i32_0 = arith.constant 0 : i32
    %c0_i32_1 = arith.constant 0 : i32
    return %c0_i32, %c0_i32_0 : i32, i32
  }
  func.func @transform_3(%arg0: i32) -> (i32, i32, i32) {
    %c0_i32 = arith.constant 0 : i32
    %c0_i32_0 = arith.constant 0 : i32
    %c0_i32_1 = arith.constant 0 : i32
    %c0_i32_2 = arith.constant 0 : i32
    return %c0_i32, %c0_i32_0, %c0_i32_1 : i32, i32, i32
  }
  func.func @transform_4(%arg0: i32) -> (i32, i32) {
    %c0_i32 = arith.constant 0 : i32
    %c0_i32_0 = arith.constant 0 : i32
    %c0_i32_1 = arith.constant 0 : i32
    return %c0_i32, %c0_i32_0 : i32, i32
  }
  func.func @transform_5(%arg0: i32) -> (i32, i32) {
    %c0_i32 = arith.constant 0 : i32
    %c0_i32_0 = arith.constant 0 : i32
    %c0_i32_1 = arith.constant 0 : i32
    return %c0_i32, %c0_i32_0 : i32, i32
  }
  func.func @transform_6(%arg0: i32) -> (i32, i32, i32) {
    %c0_i32 = arith.constant 0 : i32
    %c0_i32_0 = arith.constant 0 : i32
    %c0_i32_1 = arith.constant 0 : i32
    return %arg0, %c0_i32, %c0_i32_0 : i32, i32, i32
  }
}

</mosaic_0001>

<bundles_post_ra>
// kernel: tpu_custom_call.1
= control target key start
LH: loop header
LB: loop body
LE: loop exit
PB: predicated region body
PF: predicated region fallthrough
CT: control target
= control target key end

     0   :  { %11 = vsyncpa [#allocation3], 0  ;;  %s1761_s0 = inlined_call_operand.vmem [shape: f32[2,4,256], index: 0, kind: input, shape index: {}]   ;;  %s1762_s1 = inlined_call_operand.vmem [shape: f32[2,4], index: 1, kind: input, shape index: {}]   ;;  %s1763_s2 = inlined_call_operand.vmem [shape: f32[2,1], index: 2, kind: input, shape index: {}]   ;;  %s1764_s3 = inlined_call_operand.vmem [shape: f32[4,8,2], index: 3, kind: input, shape index: {}]   ;;  %s1765_s4 = inlined_call_operand.vmem [shape: f32[8,1], index: 4, kind: input, shape index: {}]   ;;  %s1766_s5 = inlined_call_operand.vmem [shape: f32[8,256], index: 5, kind: input, shape index: {}]   ;;  %s1767_s6 = inlined_call_operand.hbm [shape: f32[2,8,256], index: 6, kind: output, shape index: {}]  }
   0x1   :  { %13 = vsyncpa [#allocation3 + $0x1], 0  ;;  %s1345_s21 = smov 0   ;;  %s1347_s22 = smov 0  }
   0x2   :  { %s1349_s23 = smov 0   ;;  %s1351_s24 = smov 0  }
   0x3 LB: > { %s1366_s25 = sadd.s32 4294967295, %s1297_s24   ;;  %s1130_s26 = sadd.s32 4294967294, %s1297_s24   ;;  %s1297_s24 = sphi %s1351_s24, %s1773_s24   ;;  %s1293_s23 = sphi %s1349_s23, %s1772_s23   ;;  %s1289_s22 = sphi %s1347_s22, %s1771_s22   ;;  %s1285_s21 = sphi %s1345_s21, %s1770_s21  }
   0x4   : > { %s1370_s27 = sadd.s32 1, %s1297_s24   ;;  %s157_s28 = sadd.s32 1, %s1293_s23 }
   0x5   : > { %s154_s29 = ssub.s32 %s1297_s24, %s1370_s27  ;;  %p167_p0 = scmp.ne.s32.totalorder %s1293_s23, %s1289_s22 }
   0x6   : > { %p155_p1 = scmp.eq.s32.totalorder %s154_s29, 0  ;;  %p168_p2 = scmp.eq.s32.totalorder %s1366_s25, 1 }
   0x7   : > { %p173_p3 = scmp.ne.s32.totalorder %s1289_s22, %s1285_s21  ;;  %p174_p4 = scmp.eq.s32.totalorder %s1130_s26, 1 }
   0x8   : > { %s1381_s30 = scalar_select %p155_p1, %s1293_s23, %s157_s28  }
   0x9   : > { %p1383_p5 = por %p168_p2, %p167_p0  ;;  %p1387_p6 = por %p174_p4, %p173_p3 }
   0xa   : > { %p1133_p7 = scmp.ge.s32.totalorder %s1297_s24, 1  ;;  %p215_p8 = scmp.lt.s32.totalorder %s1297_s24, 3 }
   0xc   : > { %p216_p9 = pnand %p1133_p7, %p215_p8 }
   0xd   : > { %p245_p10 = scmp.lt.s32.totalorder (!%p216_p9), %s1366_s25, 1  ;;  %v1299_v0 = vmov (!%p216_p9), 0.0   ;;  %v252_v1 = vld [vmem:[%s1763_s2] sm:$0x3] (!%p216_p9)  ;;  %v1300_v2 = vmov (!%p216_p9), 0   ;;  %vm264_vm0 = vcmask (!%p216_p9), 1043456   ;;  %v370_v21 = vlaneseq (!%p216_p9) }
   0xe   : > { %219 = sbr.rel (%p216_p9) target bundleno = 1308 (0x51c), region = 44  ;;  %333 = vmatprep.mubr.f32.mxu0 (!%p216_p9), %v1299_v0  ;;  %701 = vmatprep.mubr.f32.mxu1 (!%p216_p9), %v1299_v0  ;;  %v251_v5 = vld [vmem:[%s1762_s1] sm:$0x3] (!%p216_p9)  ;;  %vm260_vm1 = vcmask (!%p216_p9), 31744   ;;  %vm550_vm2 = vcmask (!%p216_p9), 1041408   ;;  %s1301_s18 = smov (!%p216_p9), 1  }
   0xf   : > { %1224 = vset.pattern.permute.xlu0 (!%p216_p9), %v1300_v2  ;;  %1225 = vset.pattern.permute.xlu1 (!%p216_p9), %v1300_v2  ;;  %s1302_s19 = smov (!%p216_p9), 2   ;;  %s1303_s20 = smov (!%p216_p9), 127   ;;  %v377_v22 = vshrl.u32 (!%p216_p9), %v370_v21, 7  ;;  %v1417_v23 = vand.u32 (!%p216_p9), 127, %v370_v21  ;;  %vm546_vm11 = vcmask (!%p216_p9), 15360  }
  0x10   : > { %255 = vperm.xlu0 (!%p216_p9), %1224, %v252_v1   ;;  %s1304_s26 = smov (!%p216_p9), 126   ;;  %v350_v26 = vld [vmem:[%s1766_s5] ss:$8 sm:$0x3] (!%p216_p9)  ;;  %s1306_s16 = smov (!%p216_p9), 16  }
  0x11   : > { %v1419_v24 = vsub.s32 (!%p216_p9), 0, %v377_v22  ;;  %v1421_v25 = vsub.s32 (!%p216_p9), 1, %v377_v22  ;;  %v1140_v29 = vld [vmem:[%s1766_s5 + $0x1] ss:$8 sm:$0x3] (!%p216_p9)  ;;  %vm372_vm3 = vcmp.lt.s32.totalorder (!%p216_p9), %v1417_v23, 2 }
  0x12   : > { %vm394_vm4 = vcmp.lt.s32.totalorder (!%p216_p9), %v1417_v23, 1  ;;  %v1141_v32 = vld [vmem:[%s1766_s5 + $0x2] ss:$8 sm:$0x3] (!%p216_p9)  ;;  %vm416_vm5 = vcmp.lt.s32.totalorder (!%p216_p9), %v1417_v23, 127  ;;  %vm438_vm6 = vcmp.lt.s32.totalorder (!%p216_p9), %v1417_v23, 126 }
  0x13   : > { %v1431_v30 = vrot.slane (!%p216_p9), %v350_v26, %v1419_v24  ;;  %v1434_v31 = vrot.slane (!%p216_p9), %v350_v26, %v1421_v25  ;;  %v1441_v34 = vrot.slane (!%p216_p9), %v1140_v29, %v1419_v24  ;;  %v1444_v35 = vrot.slane (!%p216_p9), %v1140_v29, %v1421_v25  ;;  %v1142_v45 = vld [vmem:[%s1766_s5 + $0x3] ss:$8 sm:$0x3] (!%p216_p9)  ;;  %s1307_s17 = smov (!%p216_p9), 112   ;;  %s1308_s28 = smov (!%p216_p9), 96  }
  0x14   : > { %v1458_v43 = vrot.slane (!%p216_p9), %v1141_v32, %v1419_v24  ;;  %v1461_v44 = vrot.slane (!%p216_p9), %v1141_v32, %v1421_v25  ;;  %v1474_v54 = vrot.slane (!%p216_p9), %v1142_v45, %v1419_v24  ;;  %v1477_v55 = vrot.slane (!%p216_p9), %v1142_v45, %v1421_v25  ;;  %v1146_v29 = vld [vmem:[%s1766_s5 + $0x7] ss:$8 sm:$0x3] (!%p216_p9)  ;;  %s1168_s13 = sshll.u32 (!%p216_p9), %s1366_s25, 8 }
  0x15   : > { %s246_s11 = scalar_select %p245_p10, %s1366_s25, 1  ;;  %vm460_vm7 = vcmp.lt.s32.totalorder %v1417_v23, 32  ;;  %vm482_vm8 = vcmp.lt.s32.totalorder %v1417_v23, 16  ;;  %vm504_vm9 = vcmp.lt.s32.totalorder %v1417_v23, 112  ;;  %vm526_vm10 = vcmp.lt.s32.totalorder %v1417_v23, 96 }
  0x16   : > { %s1309_s25 = smov [#allocation2]  }
  0x17   : > { %s1167_s12 = sshll.u32 %s246_s11, 3 }
  0x18   : > { %s249_s15 = scalar_lea.vmem %s1761_s0, %s1167_s12 }
  0x19   : > { %v250_v3 = vld [vmem:[%s249_s15] sm:$0xff]  ;;  %s1305_s15 = smov 32  }
  0x1a   : > { %v259_v4 = vcombine.high %v250_v3, %v250_v3 }
  0x1c   : > { %1137 = vmatprep.subr.msk.mxu0 %vm264_vm0, %v259_v4 }
  0x1d   : > { %1138 = vmatpush1.msk.msra.mxu0 %vm264_vm0, %v250_v3 }
  0x1e   : > { %1139 = vmatmul.mubr.msk.f32.vlgmr.msra.gmra.mrb[0].mxu0 %vm260_vm1, %v251_v5 }
  0x1f   : > { %621 = vmatprep.mubr.f32.mxu0 %v1299_v0 }
  0x8f   : > { %v256_v6 = vpop.permute.xlu0 %255 }
  0xf1   : > { %v335_v7 = vpop.f32.mrb[0].mxu0 }
  0xf2   : > { %v336_v8 = vadd.f32 %v335_v7, %v256_v6  ;;  %v337_v9 = vpop.f32.mrb[1].mxu0  ;;  %v1143_v7 = vld [vmem:[%s1766_s5 + $0x4] ss:$8 sm:$0x3] }
  0xf3   : > { %v338_v10 = vadd.f32 %v337_v9, %v256_v6 }
  0xf4   : > { %v340_v11 = vmul.f32 0.5, %v336_v8 }
  0xf5   : > { %v341_v12 = vmul.f32 0.5, %v338_v10 }
  0xf6   : > { %1227 = vtanh.f32 %v340_v11  ;;  %v1503_v11 = vrot.slane %v1143_v7, %v1419_v24 }
  0xf7   : > { %1229 = vtanh.f32 %v341_v12  ;;  %v1506_v12 = vrot.slane %v1143_v7, %v1421_v25 }
 0x100   : > { %v1228_v13 = vpop.eup %1227 }
 0x101   : > { %v1230_v14 = vpop.eup %1229  ;;  %v344_v15 = vmul.f32 0.5, %v1228_v13 }
 0x102   : > { %v345_v16 = vmul.f32 0.5, %v1230_v14 }
 0x103   : > { %v346_v17 = vadd.f32 0.5, %v344_v15  ;;  %v1145_v15 = vld [vmem:[%s1766_s5 + $0x6] ss:$8 sm:$0x3] }
 0x104   : > { %v347_v18 = vadd.f32 0.5, %v345_v16 }
 0x105   : > { %v348_v19 = vmul.f32 %v346_v17, %v336_v8 }
 0x106   : > { %v349_v20 = vmul.f32 %v347_v18, %v338_v10  ;;  %v1144_v10 = vld [vmem:[%s1766_s5 + $0x5] ss:$8 sm:$0x3] }
 0x107   : > { %390 = vrot.lane.b32.xlu1 %v348_v19, %s1301_s18  ;;  %366 = vrot.lane.b32.xlu0 %v348_v19, %s1302_s19  ;;  %v1517_v17 = vrot.slane %v1144_v10, %v1419_v24  ;;  %v1520_v18 = vrot.slane %v1144_v10, %v1421_v25 }
 0x108   : > { %1151 = vmatprep.subr.msk.mxu1 %vm550_vm2, %v349_v20 }
 0x109   : > { %1152 = vmatpush1.msk.msra.mxu1 %vm550_vm2, %v348_v19 }
 0x10b   : > { %368 = vrot.lane.b32.xlu1 %v349_v20, %s1302_s19  ;;  %392 = vrot.lane.b32.xlu0 %v349_v20, %s1301_s18 }
 0x10f   : > { %412 = vrot.lane.b32.xlu1 %v348_v19, %s1303_s20  ;;  %414 = vrot.lane.b32.xlu0 %v349_v20, %s1303_s20 }
 0x113   : > { %434 = vrot.lane.b32.xlu1 %v348_v19, %s1304_s26  ;;  %436 = vrot.lane.b32.xlu0 %v349_v20, %s1304_s26 }
 0x179   : > { %v391_v27 = vpop.permute.xlu1 %390  ;;  %v367_v28 = vpop.permute.xlu0 %366 }
 0x17d   : > { %v369_v33 = vpop.permute.xlu1 %368  ;;  %v393_v36 = vpop.permute.xlu0 %392 }
 0x17e   : > { %v373_v37 = vsel %vm372_vm3, %v367_v28, %v369_v33  ;;  %v374_v38 = vsel %vm372_vm3, %v369_v33, %v367_v28  ;;  %v395_v39 = vsel %vm394_vm4, %v391_v27, %v393_v36  ;;  %v396_v40 = vsel %vm394_vm4, %v393_v36, %v391_v27 }
 0x17f   : > { %v386_v41 = vadd.f32 %v1431_v30, %v374_v38  ;;  %v387_v42 = vadd.f32 %v1434_v31, %v373_v37  ;;  %v408_v48 = vadd.f32 %v1441_v34, %v396_v40  ;;  %v409_v49 = vadd.f32 %v1444_v35, %v395_v39 }
 0x180   : > { %v1530_v27 = vrot.slane %v1145_v15, %v1419_v24  ;;  %v1533_v28 = vrot.slane %v1145_v15, %v1421_v25  ;;  %v1546_v40 = vrot.slane %v1146_v29, %v1419_v24 }
 0x181   : > { %v388_v46 = vmax.f32 %v348_v19, %v386_v41  ;;  %v389_v47 = vmax.f32 %v349_v20, %v387_v42  ;;  %v413_v50 = vpop.permute.xlu1 %412  ;;  %v415_v51 = vpop.permute.xlu0 %414  ;;  %v1549_v41 = vrot.slane %v1146_v29, %v1421_v25 }
 0x182   : > { %v417_v52 = vsel %vm416_vm5, %v413_v50, %v415_v51  ;;  %v418_v53 = vsel %vm416_vm5, %v415_v51, %v413_v50 }
 0x183   : > { %v410_v56 = vmax.f32 %v388_v46, %v408_v48  ;;  %v411_v57 = vmax.f32 %v389_v47, %v409_v49  ;;  %v430_v58 = vadd.f32 %v1458_v43, %v417_v52  ;;  %v431_v59 = vadd.f32 %v1461_v44, %v418_v53 }
 0x185   : > { %v435_v60 = vpop.permute.xlu1 %434  ;;  %v437_v61 = vpop.permute.xlu0 %436  ;;  %v432_v1 = vmax.f32 %v410_v56, %v430_v58  ;;  %v433_v2 = vmax.f32 %v411_v57, %v431_v59 }
 0x186   : > { %v439_v62 = vsel %vm438_vm6, %v435_v60, %v437_v61  ;;  %v440_v63 = vsel %vm438_vm6, %v437_v61, %v435_v60 }
 0x187   : > { %v452_v3 = vadd.f32 %v1474_v54, %v439_v62  ;;  %v453_v4 = vadd.f32 %v1477_v55, %v440_v63 }
 0x189   : > { %v454_v5 = vmax.f32 %v432_v1, %v452_v3  ;;  %v455_v6 = vmax.f32 %v433_v2, %v453_v4 }
 0x18b   : > { %458 = vrot.lane.b32.xlu0 %v455_v6, %s1305_s15  ;;  %456 = vrot.lane.b32.xlu1 %v454_v5, %s1305_s15 }
 0x18f   : > { %480 = vrot.lane.b32.xlu0 %v455_v6, %s1306_s16  ;;  %478 = vrot.lane.b32.xlu1 %v454_v5, %s1306_s16 }
 0x193   : > { %502 = vrot.lane.b32.xlu0 %v455_v6, %s1307_s17  ;;  %500 = vrot.lane.b32.xlu1 %v454_v5, %s1307_s17 }
 0x197   : > { %524 = vrot.lane.b32.xlu0 %v455_v6, %s1308_s28  ;;  %522 = vrot.lane.b32.xlu1 %v454_v5, %s1308_s28 }
 0x1fd   : > { %v459_v8 = vpop.permute.xlu0 %458  ;;  %v457_v9 = vpop.permute.xlu1 %456 }
 0x1fe   : > { %v461_v13 = vsel %vm460_vm7, %v457_v9, %v459_v8  ;;  %v462_v14 = vsel %vm460_vm7, %v459_v8, %v457_v9 }
 0x1ff   : > { %v474_v22 = vadd.f32 %v1503_v11, %v462_v14  ;;  %v475_v26 = vadd.f32 %v1506_v12, %v461_v13 }
 0x201   : > { %v481_v16 = vpop.permute.xlu0 %480  ;;  %v479_v19 = vpop.permute.xlu1 %478  ;;  %v476_v42 = vmax.f32 %v454_v5, %v474_v22  ;;  %v477_v45 = vmax.f32 %v455_v6, %v475_v26 }
 0x202   : > { %v483_v20 = vsel %vm482_vm8, %v479_v19, %v481_v16  ;;  %v484_v21 = vsel %vm482_vm8, %v481_v16, %v479_v19 }
 0x203   : > { %v496_v32 = vadd.f32 %v1517_v17, %v484_v21  ;;  %v497_v33 = vadd.f32 %v1520_v18, %v483_v20 }
 0x205   : > { %v503_v36 = vpop.permute.xlu0 %502  ;;  %v501_v37 = vpop.permute.xlu1 %500  ;;  %v498_v48 = vmax.f32 %v476_v42, %v496_v32  ;;  %v499_v49 = vmax.f32 %v477_v45, %v497_v33 }
 0x206   : > { %v505_v38 = vsel %vm504_vm9, %v501_v37, %v503_v36  ;;  %v506_v39 = vsel %vm504_vm9, %v503_v36, %v501_v37 }
 0x207   : > { %v518_v46 = vadd.f32 %v1530_v27, %v505_v38  ;;  %v519_v47 = vadd.f32 %v1533_v28, %v506_v39 }
 0x209   : > { %v525_v50 = vpop.permute.xlu0 %524  ;;  %v523_v51 = vpop.permute.xlu1 %522  ;;  %v520_v53 = vmax.f32 %v498_v48, %v518_v46  ;;  %v521_v56 = vmax.f32 %v499_v49, %v519_v47  ;;  %v365_v46 = vld [vmem:[%s1764_s3] sm:$0xff] }
 0x20a   : > { %v527_v52 = vsel %vm526_vm10, %v523_v51, %v525_v50  ;;  %v528_v24 = vsel %vm526_vm10, %v525_v50, %v523_v51  ;;  %1153 = vmatmul.mubr.msk.f32.vlgmr.msra.gmra.mrb[0].mxu1 %vm546_vm11, %v365_v46 }
 0x20b   : > { %v540_v25 = vadd.f32 %v1546_v40, %v527_v52  ;;  %v541_v57 = vadd.f32 %v1549_v41, %v528_v24  ;;  %863 = vmatprep.mubr.f32.mxu1 %v1299_v0 }
 0x20d   : > { %v542_v58 = vmax.f32 %v520_v53, %v540_v25  ;;  %v543_v59 = vmax.f32 %v521_v56, %v541_v57 }
 0x20f   : > { %710 = vrot.lane.b32.xlu0 %v543_v59, %s1302_s19  ;;  %1148 = vmatprep.subr.msk.mxu0 %vm550_vm2, %v543_v59 }
 0x210   : > { %708 = vrot.lane.b32.xlu1 %v542_v58, %s1302_s19  ;;  %1149 = vmatpush1.msk.msra.mxu0 %vm550_vm2, %v542_v58 }
 0x213   : > { %720 = vrot.lane.b32.xlu0 %v543_v59, %s1301_s18 }
 0x214   : > { %718 = vrot.lane.b32.xlu1 %v542_v58, %s1301_s18 }
 0x217   : > { %730 = vrot.lane.b32.xlu0 %v543_v59, %s1303_s20 }
 0x218   : > { %728 = vrot.lane.b32.xlu1 %v542_v58, %s1303_s20 }
 0x21b   : > { %740 = vrot.lane.b32.xlu0 %v543_v59, %s1304_s26 }
 0x21c   : > { %738 = vrot.lane.b32.xlu1 %v542_v58, %s1304_s26 }
 0x281   : > { %v711_v60 = vpop.permute.xlu0 %710 }
 0x282   : > { %v709_v61 = vpop.permute.xlu1 %708 }
 0x283   : > { %v712_v62 = vsel %vm372_vm3, %v709_v61, %v711_v60  ;;  %v713_v63 = vsel %vm372_vm3, %v711_v60, %v709_v61 }
 0x284   : > { %v714_v5 = vadd.f32 %v713_v63, %v1431_v30  ;;  %v715_v6 = vadd.f32 %v712_v62, %v1434_v31 }
 0x285   : > { %v721_v1 = vpop.permute.xlu0 %720 }
 0x286   : > { %v719_v2 = vpop.permute.xlu1 %718  ;;  %v716_v15 = vmax.f32 %v542_v58, %v714_v5  ;;  %v717_v16 = vmax.f32 %v543_v59, %v715_v6 }
 0x287   : > { %v722_v3 = vsel %vm394_vm4, %v719_v2, %v721_v1  ;;  %v723_v4 = vsel %vm394_vm4, %v721_v1, %v719_v2 }
 0x288   : > { %v724_v8 = vadd.f32 %v723_v4, %v1441_v34  ;;  %v725_v9 = vadd.f32 %v722_v3, %v1444_v35 }
 0x289   : > { %v731_v7 = vpop.permute.xlu0 %730 }
 0x28a   : > { %v729_v10 = vpop.permute.xlu1 %728  ;;  %v726_v22 = vmax.f32 %v716_v15, %v724_v8  ;;  %v727_v26 = vmax.f32 %v717_v16, %v725_v9 }
 0x28b   : > { %v732_v13 = vsel %vm416_vm5, %v729_v10, %v731_v7  ;;  %v733_v14 = vsel %vm416_vm5, %v731_v7, %v729_v10 }
 0x28c   : > { %v734_v19 = vadd.f32 %v732_v13, %v1458_v43  ;;  %v735_v20 = vadd.f32 %v733_v14, %v1461_v44 }
 0x28d   : > { %v741_v21 = vpop.permute.xlu0 %740 }
 0x28e   : > { %v739_v29 = vpop.permute.xlu1 %738  ;;  %v736_v36 = vmax.f32 %v726_v22, %v734_v19  ;;  %v737_v37 = vmax.f32 %v727_v26, %v735_v20 }
 0x28f   : > { %v742_v32 = vsel %vm438_vm6, %v739_v29, %v741_v21  ;;  %v743_v33 = vsel %vm438_vm6, %v741_v21, %v739_v29 }
 0x290   : > { %v744_v38 = vadd.f32 %v742_v32, %v1474_v54  ;;  %v745_v39 = vadd.f32 %v743_v33, %v1477_v55 }
 0x292   : > { %v746_v42 = vmax.f32 %v736_v36, %v744_v38  ;;  %v747_v45 = vmax.f32 %v737_v37, %v745_v39 }
 0x294   : > { %750 = vrot.lane.b32.xlu0 %v747_v45, %s1305_s15  ;;  %748 = vrot.lane.b32.xlu1 %v746_v42, %s1305_s15 }
 0x298   : > { %760 = vrot.lane.b32.xlu0 %v747_v45, %s1306_s16  ;;  %758 = vrot.lane.b32.xlu1 %v746_v42, %s1306_s16 }
 0x29c   : > { %770 = vrot.lane.b32.xlu0 %v747_v45, %s1307_s17  ;;  %768 = vrot.lane.b32.xlu1 %v746_v42, %s1307_s17 }
 0x2a0   : > { %780 = vrot.lane.b32.xlu0 %v747_v45, %s1308_s28  ;;  %778 = vrot.lane.b32.xlu1 %v746_v42, %s1308_s28 }
 0x306   : > { %v751_v47 = vpop.permute.xlu0 %750  ;;  %v749_v48 = vpop.permute.xlu1 %748 }
 0x307   : > { %v752_v49 = vsel %vm460_vm7, %v749_v48, %v751_v47  ;;  %v753_v50 = vsel %vm460_vm7, %v751_v47, %v749_v48 }
 0x308   : > { %v754_v56 = vadd.f32 %v753_v50, %v1503_v11  ;;  %v755_v25 = vadd.f32 %v752_v49, %v1506_v12 }
 0x30a   : > { %v761_v51 = vpop.permute.xlu0 %760  ;;  %v759_v52 = vpop.permute.xlu1 %758  ;;  %v756_v63 = vmax.f32 %v746_v42, %v754_v56  ;;  %v757_v1 = vmax.f32 %v747_v45, %v755_v25 }
 0x30b   : > { %v762_v24 = vsel %vm482_vm8, %v759_v52, %v761_v51  ;;  %v763_v53 = vsel %vm482_vm8, %v761_v51, %v759_v52 }
 0x30c   : > { %v764_v57 = vadd.f32 %v763_v53, %v1517_v17  ;;  %v765_v58 = vadd.f32 %v762_v24, %v1520_v18 }
 0x30e   : > { %v771_v59 = vpop.permute.xlu0 %770  ;;  %v769_v60 = vpop.permute.xlu1 %768  ;;  %v766_v4 = vmax.f32 %v756_v63, %v764_v57  ;;  %v767_v5 = vmax.f32 %v757_v1, %v765_v58 }
 0x30f   : > { %v772_v61 = vsel %vm504_vm9, %v769_v60, %v771_v59  ;;  %v773_v62 = vsel %vm504_vm9, %v771_v59, %v769_v60 }
 0x310   : > { %v774_v2 = vadd.f32 %v772_v61, %v1530_v27  ;;  %v775_v3 = vadd.f32 %v773_v62, %v1533_v28 }
 0x312   : > { %v781_v6 = vpop.permute.xlu0 %780  ;;  %v779_v7 = vpop.permute.xlu1 %778  ;;  %v776_v10 = vmax.f32 %v766_v4, %v774_v2  ;;  %v777_v13 = vmax.f32 %v767_v5, %v775_v3 }
 0x313   : > { %v782_v8 = vsel %vm526_vm10, %v779_v7, %v781_v6  ;;  %v783_v9 = vsel %vm526_vm10, %v781_v6, %v779_v7 }
 0x314   : > { %v784_v14 = vadd.f32 %v782_v8, %v1546_v40  ;;  %v785_v15 = vadd.f32 %v783_v9, %v1549_v41 }
 0x316   : > { %v786_v16 = vmax.f32 %v776_v10, %v784_v14  ;;  %v787_v19 = vmax.f32 %v777_v13, %v785_v15 }
 0x318   : > { %874 = vrot.lane.b32.xlu0 %v787_v19, %s1302_s19  ;;  %872 = vrot.lane.b32.xlu1 %v786_v16, %s1302_s19 }
 0x319   : > { %1155 = vmatprep.subr.msk.mxu1 %vm550_vm2, %v787_v19 }
 0x31a   : > { %1156 = vmatpush1.msk.msra.mxu1 %vm550_vm2, %v786_v16 }
 0x31c   : > { %884 = vrot.lane.b32.xlu0 %v787_v19, %s1301_s18  ;;  %882 = vrot.lane.b32.xlu1 %v786_v16, %s1301_s18  ;;  %s1719_s18 = scalar_lea.hbm %s1767_s6, %s1168_s13 }
 0x320   : > { %894 = vrot.lane.b32.xlu0 %v787_v19, %s1303_s20  ;;  %892 = vrot.lane.b32.xlu1 %v786_v16, %s1303_s20 }
 0x324   : > { %904 = vrot.lane.b32.xlu0 %v787_v19, %s1304_s26  ;;  %902 = vrot.lane.b32.xlu1 %v786_v16, %s1304_s26  ;;  %s1239_s26 = sshll.u32 %s1309_s25, 4  ;;  %s1240_s26 = int_to_ptr.vmem [resolvable:$false] %s1239_s26 }
 0x38a   : > { %v875_v20 = vpop.permute.xlu0 %874  ;;  %v873_v21 = vpop.permute.xlu1 %872 }
 0x38b   : > { %v876_v22 = vsel %vm372_vm3, %v873_v21, %v875_v20  ;;  %v877_v26 = vsel %vm372_vm3, %v875_v20, %v873_v21 }
 0x38c   : > { %v878_v37 = vadd.f32 %v877_v26, %v1431_v30  ;;  %v879_v38 = vadd.f32 %v876_v22, %v1434_v31 }
 0x38e   : > { %v885_v29 = vpop.permute.xlu0 %884  ;;  %v883_v32 = vpop.permute.xlu1 %882  ;;  %v880_v49 = vmax.f32 %v786_v16, %v878_v37  ;;  %v881_v50 = vmax.f32 %v787_v19, %v879_v38 }
 0x38f   : > { %v886_v33 = vsel %vm394_vm4, %v883_v32, %v885_v29  ;;  %v887_v36 = vsel %vm394_vm4, %v885_v29, %v883_v32 }
 0x390   : > { %v888_v39 = vadd.f32 %v887_v36, %v1441_v34  ;;  %v889_v42 = vadd.f32 %v886_v33, %v1444_v35 }
 0x392   : > { %v895_v45 = vpop.permute.xlu0 %894  ;;  %v893_v46 = vpop.permute.xlu1 %892  ;;  %v890_v52 = vmax.f32 %v880_v49, %v888_v39  ;;  %v891_v31 = vmax.f32 %v881_v50, %v889_v42 }
 0x393   : > { %v896_v47 = vsel %vm416_vm5, %v893_v46, %v895_v45  ;;  %v897_v48 = vsel %vm416_vm5, %v895_v45, %v893_v46 }
 0x394   : > { %v898_v51 = vadd.f32 %v896_v47, %v1458_v43  ;;  %v899_v30 = vadd.f32 %v897_v48, %v1461_v44  ;;  %v1154_v44 = vld [vmem:[%s1764_s3 + $0x10] sm:$0xff] }
 0x395   : > { %1157 = vmatmul.mubr.msk.f32.vlgmr.msra.gmra.mrb[0].mxu1 %vm546_vm11, %v1154_v44 }
 0x396   : > { %v905_v24 = vpop.permute.xlu0 %904  ;;  %v903_v34 = vpop.permute.xlu1 %902  ;;  %v900_v56 = vmax.f32 %v890_v52, %v898_v51  ;;  %v901_v25 = vmax.f32 %v891_v31, %v899_v30  ;;  %1027 = vmatprep.mubr.f32.mxu1 %v1299_v0  ;;  %v1036_v0 = vld [vmem:[%s1765_s4] sm:$0xff] }
 0x397   : > { %v906_v35 = vsel %vm438_vm6, %v903_v34, %v905_v24  ;;  %v907_v53 = vsel %vm438_vm6, %v905_v24, %v903_v34 }
 0x398   : > { %v908_v57 = vadd.f32 %v906_v35, %v1474_v54  ;;  %v909_v58 = vadd.f32 %v907_v53, %v1477_v55  ;;  %v1147_v54 = vld [vmem:[%s1764_s3 + $0x8] sm:$0xff] }
 0x399   : > { %1150 = vmatmul.mubr.msk.f32.vlgmr.msra.gmra.mrb[2].mxu0 %vm546_vm11, %v1147_v54 }
 0x39a   : > { %v910_v59 = vmax.f32 %v900_v56, %v908_v57  ;;  %v911_v43 = vmax.f32 %v901_v25, %v909_v58 }
 0x39c   : > { %914 = vrot.lane.b32.xlu0 %v911_v43, %s1305_s15  ;;  %912 = vrot.lane.b32.xlu1 %v910_v59, %s1305_s15  ;;  %s1241_s15 = scalar_lea.vmem %s1240_s26, 512 }
 0x3a0   : > { %924 = vrot.lane.b32.xlu0 %v911_v43, %s1306_s16  ;;  %922 = vrot.lane.b32.xlu1 %v910_v59, %s1306_s16 }
 0x3a4   : > { %934 = vrot.lane.b32.xlu0 %v911_v43, %s1307_s17  ;;  %932 = vrot.lane.b32.xlu1 %v910_v59, %s1307_s17 }
 0x3a8   : > { %944 = vrot.lane.b32.xlu0 %v911_v43, %s1308_s28  ;;  %942 = vrot.lane.b32.xlu1 %v910_v59, %s1308_s28  ;;  %s242_s28 = sand.u32 1, %s1289_s22  }
 0x3a9   : > { %s1134_s12 = sshll.u32 %s242_s28, 4  ;;  %s1057_s19 = scalar_lea.sflag [#allocation3], %s242_s28 }
 0x3aa   : > { %s244_s14 = scalar_lea.vmem [#allocation2], %s1134_s12 }
 0x3ab   : > { %s1071_s29 = sshll.u32 %s244_s14, 4  ;;  %s1721_s29 = int_to_ptr.vmem [resolvable:$true] %s1071_s29 }
 0x3ac   : > { %1039 = vperm.xlu1 %1225, %v1036_v0   ;;  %s1235_s20 = scalar_lea.vmem %s1721_s29, 256  ;;  %p1242_p0 = scmp.lt.s32.totalorder %s1721_s29, %s1240_s26 }
 0x3ad   : > { %p1236_p11 = scmp.ne.s32.totalorder %s1721_s29, %s1235_s20  ;;  %p1243_p1 = scmp.lt.s32.totalorder %s1241_s15, %s1235_s20 }
 0x3af   : > { %p1237_p12 = pnand %p1236_p11, %p1383_p5  ;;  %p1244_p2 = por %p1243_p1, %p1242_p0 }
 0x3b1   : > { %p1238_p13 = pneg %p1237_p12 }
 0x3b3   : > { %p1245_p3 = pnand %p1244_p2, %p1238_p13 }
 0x40e   : > { %v915_v55 = vpop.permute.xlu0 %914  ;;  %v913_v60 = vpop.permute.xlu1 %912 }
 0x40f   : > { %v916_v61 = vsel %vm460_vm7, %v913_v60, %v915_v55  ;;  %v917_v62 = vsel %vm460_vm7, %v915_v55, %v913_v60 }
 0x410   : > { %v918_v4 = vadd.f32 %v917_v62, %v1503_v11  ;;  %v919_v5 = vadd.f32 %v916_v61, %v1506_v12 }
 0x412   : > { %v925_v63 = vpop.permute.xlu0 %924  ;;  %v923_v1 = vpop.permute.xlu1 %922  ;;  %v920_v14 = vmax.f32 %v910_v59, %v918_v4  ;;  %v921_v15 = vmax.f32 %v911_v43, %v919_v5 }
 0x413   : > { %v926_v2 = vsel %vm482_vm8, %v923_v1, %v925_v63  ;;  %v927_v3 = vsel %vm482_vm8, %v925_v63, %v923_v1 }
 0x414   : > { %v928_v6 = vadd.f32 %v927_v3, %v1517_v17  ;;  %v929_v7 = vadd.f32 %v926_v2, %v1520_v18 }
 0x416   : > { %v935_v8 = vpop.permute.xlu0 %934  ;;  %v933_v9 = vpop.permute.xlu1 %932  ;;  %v930_v19 = vmax.f32 %v920_v14, %v928_v6  ;;  %v931_v12 = vmax.f32 %v921_v15, %v929_v7 }
 0x417   : > { %v936_v10 = vsel %vm504_vm9, %v933_v9, %v935_v8  ;;  %v937_v13 = vsel %vm504_vm9, %v935_v8, %v933_v9 }
 0x418   : > { %v938_v16 = vadd.f32 %v936_v10, %v1530_v27  ;;  %v939_v11 = vadd.f32 %v937_v13, %v1533_v28  ;;  %v1158_v28 = vld [vmem:[%s1764_s3 + $0x18] sm:$0xff] }
 0x41a   : > { %v945_v20 = vpop.permute.xlu0 %944  ;;  %v943_v17 = vpop.permute.xlu1 %942  ;;  %v940_v22 = vmax.f32 %v930_v19, %v938_v16  ;;  %v941_v26 = vmax.f32 %v931_v12, %v939_v11 }
 0x41b   : > { %v946_v18 = vsel %vm526_vm10, %v943_v17, %v945_v20  ;;  %v947_v21 = vsel %vm526_vm10, %v945_v20, %v943_v17 }
 0x41c   : > { %v948_v29 = vadd.f32 %v946_v18, %v1546_v40  ;;  %v949_v32 = vadd.f32 %v947_v21, %v1549_v41 }
 0x41e   : > { %v950_v33 = vmax.f32 %v940_v22, %v948_v29  ;;  %v951_v27 = vmax.f32 %v941_v26, %v949_v32 }
 0x420   : > { %1159 = vmatprep.subr.msk.mxu1 %vm550_vm2, %v951_v27 }
 0x421   : > { %1160 = vmatpush1.msk.msra.mxu1 %vm550_vm2, %v950_v33 }
 0x422   : > { %1161 = vmatmul.mubr.msk.f32.vlgmr.msra.gmra.mrb[0].mxu1 %vm546_vm11, %v1158_v28 }
 0x42b   : > { %v1040_v38 = vpop.permute.xlu1 %1039 }
 0x46c   : > { %v623_v23 = vpop.f32.mrb[2].mxu0 }
 0x46d   : > { %v625_v36 = vpop.f32.mrb[3].mxu0 }
 0x4f5   : > { %v1029_v37 = vpop.f32.mrb[0].mxu1 }
 0x4f6   : > { %v1169_v40 = vadd.f32 %v1029_v37, %v623_v23  ;;  %v1031_v41 = vpop.f32.mrb[1].mxu1 }
 0x4f7   : > { %v1170_v39 = vadd.f32 %v1031_v41, %v625_v36 }
 0x4f8   : > { %v1042_v42 = vadd.f32 %v1169_v40, %v1040_v38 }
 0x4f9   : > { %v1043_v45 = vadd.f32 %v1170_v39, %v1040_v38 }
 0x4fa   : > { %v1044_v46 = vmul.f32 0.5, %v1042_v42 }
 0x4fb   : > { %v1045_v47 = vmul.f32 0.5, %v1043_v45 }
 0x4fc   : > { %1231 = vtanh.f32 %v1044_v46 }
 0x4fd   : > { %1233 = vtanh.f32 %v1045_v47 }
 0x506   : > { %v1232_v48 = vpop.eup %1231 }
 0x507   : > { %v1234_v49 = vpop.eup %1233  ;;  %v1048_v50 = vmul.f32 0.5, %v1232_v48 }
 0x508   : > { %v1049_v51 = vmul.f32 0.5, %v1234_v49 }
 0x509   : > { %v1050_v30 = vadd.f32 0.5, %v1048_v50 }
 0x50a   : > { %v1051_v52 = vadd.f32 0.5, %v1049_v51 }
 0x50b   : > { %v1052_v31 = vmul.f32 %v1050_v30, %v1042_v42 }
 0x50c   : > { %v1053_v24 = vmul.f32 %v1051_v52, %v1043_v45 }
 0x50d   : > { %1054 = vst [vmem:[%s244_s14] sm:$0xff] %v1052_v31 }
 0x50e   : > { %1055 = vst [vmem:[%s244_s14 + $0x8] sm:$0xff] %v1053_v24 }
 0x50f   : > { %1248 = shalt.err (!%p1245_p3)
}
 0x510   : > { %s1249_s11 = scalar_lea.hbm %s1719_s18, 256  ;;  %s1253_s28 = scalar_lea.hbm %s1767_s6, 512 }
 0x511   : > { %p1250_p4 = scmp.ne.s32.totalorder %s1719_s18, %s1249_s11  ;;  %p1254_p9 = scmp.lt.u32.totalorder %s1719_s18, %s1767_s6 }
 0x512   : > { %p1255_p10 = scmp.lt.u32.totalorder %s1253_s28, %s1249_s11  ;;  %p1257_p12 = scmp.lt.u32.totalorder %s1249_s11, %s1719_s18 }
 0x513   : > { %p1251_p7 = pnand %p1250_p4, %p1383_p5 }
 0x514   : > { %p1256_p11 = por %p1255_p10, %p1254_p9 }
 0x515   : > { %p1252_p8 = pneg %p1251_p7 }
 0x516   : > { %p1258_p13 = por %p1257_p12, %p1256_p11 }
 0x518   : > { %p1259_p0 = pnand %p1258_p13, %p1252_p8 }
 0x51a   : > { %1262 = shalt.err (!%p1259_p0)
}
 0x51b   : > { %1175 = dma.vmem_to_hbm [thread:$0]  (%p1383_p5), %s1721_s29, 256, %s1719_s18, %s1057_s19  }
 0x51c PF: > { %p1181_p1 = scmp.ge.s32.totalorder %s1297_s24, 2  ;;  %s1083_s14 = sand.u32 1, %s1285_s21  }
 0x51d   : > { %s1084_s9 = scalar_lea.sflag [#allocation3], %s1083_s14 }
 0x51e   : > { %p1178_p2 = pnand %p1181_p1, %p1387_p6 }
 0x520   : > { %1280 = dma.done.wait (!%p1178_p2), %s1084_s9, 256  }
 0x521   : > { %1282 = vsyncadd (!%p1178_p2), %s1084_s9, 4294967040  ;;  %p16_p3 = scmp.ge.s32.totalorder %s1370_s27, 4   ;;  %s1770_s21 = smov %s1289_s22 }
 0x522   : > { %s1771_s22 = smov %s1293_s23  ;;  %s1772_s23 = smov %s1381_s30 }
 0x523   : > { %s1773_s24 = smov %s1370_s27  ;;  %18 = sbr.rel (!%p16_p3) target bundleno = 3 (0x3), region = 89 }
 0x52a   :  { %1089 = vsyncpa [#allocation3], 1 }
 0x52b   :  { %1091 = vsyncpa [#allocation3 + $0x1], 1 }

</bundles_post_ra>
